<compile_context>
chip_gen: v7x
topology: tpu7x:2x2x1
jax: 0.10.0
libtpu: 0.0.40
codegen_flags: <defaults>
</compile_context>

<pallas_src>
import jax
import jax.numpy as jnp
from jax.experimental import pallas as pl
from jax.experimental.pallas import tpu as pltpu

_LANES = 128              # vreg lane width
_MAX_TILE_ROWS = 2048     # (2048, 128) f32 tile = 1 MiB per pipeline buffer
_SINGLE_BLOCK_ROWS = 64   # at/below this, one block; not worth splitting


def _add_kernel(update_ref, verts_ref, out_ref):
    # One VPU vadd per output vreg on a lane-dense (tile_rows, 128) tile.
    out_ref[...] = update_ref[...] + verts_ref[...]


def model_forward(update: jax.Array, verts: jax.Array, *, use_pallas: bool = True) -> jax.Array:
    """Pallas equivalent of Model.forward(): update + verts."""
    assert update.shape == verts.shape and update.dtype == verts.dtype
    orig_shape = update.shape
    n = int(update.size)

    # Fallback: a standalone elementwise add that XLA fuses. Used (a) on
    # request, (b) for empty inputs, (c) whenever the flat size is not
    # lane-aligned (realigning would require pad/slice copies costing more
    # HBM traffic than the add itself).
    if (not use_pallas) or n == 0 or (n % _LANES) != 0:
        return update + verts

    rows = n // _LANES
    itemsize = jnp.dtype(update.dtype).itemsize
    sub = 8 * max(1, 4 // itemsize)   # sublane multiple: f32 -> 8, bf16 -> 16, int8 -> 32

    if rows <= _SINGLE_BLOCK_ROWS:
        # Single block equal to the full array dims (always a legal block shape).
        tile_rows, grid_rows = rows, 1
    else:
        # >= 2 grid steps so both v7x TensorCores stream HBM; cap the tile so
        # per-buffer VMEM stays small while amortizing per-step overhead.
        half = ((rows + 1) // 2 + sub - 1) // sub * sub
        tile_rows = min(_MAX_TILE_ROWS, half)
        grid_rows = pl.cdiv(rows, tile_rows)

    # Free bitcast views (contiguous, row-major): no data movement.
    upd2d = update.reshape(rows, _LANES)
    ver2d = verts.reshape(rows, _LANES)

    spec = pl.BlockSpec((tile_rows, _LANES), lambda i: (i, 0))
    out2d = pl.pallas_call(
        _add_kernel,
        out_shape=jax.ShapeDtypeStruct((rows, _LANES), update.dtype),
        grid=(grid_rows,),
        in_specs=[spec, spec],
        out_specs=spec,
        compiler_params=pltpu.CompilerParams(
            dimension_semantics=("parallel",),
        ),
    )(upd2d, ver2d)

    # Free bitcast back to the original (V, 3) shape.
    return out2d.reshape(orig_shape)


if __name__ == "__main__":
    key = jax.random.PRNGKey(0)
    k_verts, k_update = jax.random.split(key)

    # Small synthetic mesh matching the module: 256 vertices, xyz coordinates.
    V, C = 256, 3
    verts = jax.random.normal(k_verts, (V, C), dtype=jnp.float32)
    # Deterministic parameter init matching torch.rand(shape) * 0.001
    update = jax.random.uniform(k_update, (V, C), dtype=jnp.float32) * 0.001

    fwd = jax.jit(model_forward)
    out = jax.block_until_ready(fwd(update, verts))

    ref = update + verts
    assert out.shape == (V, C)
    assert out.dtype == ref.dtype
    assert jnp.allclose(out, ref, atol=1e-6), "mismatch vs reference (pallas path)"

    # Ragged size (flat size 750, not a multiple of 128) exercises the XLA
    # fallback path; verify it as well.
    V2 = 250
    verts2 = jax.random.normal(k_verts, (V2, C), dtype=jnp.float32)
    update2 = jax.random.uniform(k_update, (V2, C), dtype=jnp.float32) * 0.001
    out2 = jax.block_until_ready(fwd(update2, verts2))
    assert jnp.allclose(out2, update2 + verts2, atol=1e-6), "mismatch vs reference (fallback path)"

    print("KERNEL_OK")
</pallas_src>

<mosaic_0001>
module attributes {stable_mosaic.version = 11 : i64} {
  func.func @_add_kernel(%arg0: i32, %arg1: memref<6x128xf32, #tpu.memory_space<vmem>>, %arg2: memref<6x128xf32, #tpu.memory_space<vmem>>, %arg3: memref<6x128xf32, #tpu.memory_space<vmem>>) attributes {dimension_semantics = [#tpu.dimension_semantics<parallel>], iteration_bounds = array<i64: 1>, scalar_prefetch = 0 : i64, scratch_operands = 0 : i64, tpu.core_type = #tpu.core_type<tc>, window_params = [{transform_indices = @transform_0, window_bounds = array<i64: 6, 128>}, {transform_indices = @transform_1, window_bounds = array<i64: 6, 128>}, {transform_indices = @transform_2, window_bounds = array<i64: 6, 128>}]} {
    %c0 = arith.constant 0 : index
    %c0_0 = arith.constant 0 : index
    %0 = vector.load %arg1[%c0, %c0_0] : memref<6x128xf32, #tpu.memory_space<vmem>>, vector<6x128xf32>
    %c0_1 = arith.constant 0 : index
    %c0_2 = arith.constant 0 : index
    %1 = vector.load %arg2[%c0_1, %c0_2] : memref<6x128xf32, #tpu.memory_space<vmem>>, vector<6x128xf32>
    %2 = arith.addf %0, %1 : vector<6x128xf32>
    %c0_3 = arith.constant 0 : index
    %c0_4 = arith.constant 0 : index
    %3 = vector.load %arg3[%c0_3, %c0_4] : memref<6x128xf32, #tpu.memory_space<vmem>>, vector<6x128xf32>
    tpu.vector_store %arg3[%c0_3, %c0_4], %2 {strides = array<i32>} : memref<6x128xf32, #tpu.memory_space<vmem>>, vector<6x128xf32>,
    return
  }
  func.func @transform_0(%arg0: i32) -> (i32, i32) {
    %c0_i32 = arith.constant 0 : i32
    %c0_i32_0 = arith.constant 0 : i32
    return %arg0, %c0_i32 : i32, i32
  }
  func.func @transform_1(%arg0: i32) -> (i32, i32) {
    %c0_i32 = arith.constant 0 : i32
    %c0_i32_0 = arith.constant 0 : i32
    return %arg0, %c0_i32 : i32, i32
  }
  func.func @transform_2(%arg0: i32) -> (i32, i32) {
    %c0_i32 = arith.constant 0 : i32
    %c0_i32_0 = arith.constant 0 : i32
    return %arg0, %c0_i32 : i32, i32
  }
}

</mosaic_0001>

<bundles_post_ra>
// kernel: model_forward.1
= control target key start
LH: loop header
LB: loop body
LE: loop exit
PB: predicated region body
PF: predicated region fallthrough
CT: control target
= control target key end

     0   :  { %s43_s0 = inlined_call_operand.vmem [shape: f32[6,128], index: 0, kind: input, shape index: {}]   ;;  %s44_s1 = inlined_call_operand.vmem [shape: f32[6,128], index: 1, kind: input, shape index: {}]   ;;  %s45_s2 = inlined_call_operand.vmem [shape: f32[6,128], index: 2, kind: output, shape index: {}]  }
   0x1   :  { %v11_v0 = vld [vmem:[%s43_s0] sm:$0x3f] }
   0x2   :  { %v12_v1 = vld [vmem:[%s44_s1] sm:$0x3f] }
   0x3   :  { %v13_v2 = vadd.f32 %v12_v1, %v11_v0 }
   0x5   :  { %14 = vst [vmem:[%s45_s2] sm:$0x3f] %v13_v2 }

</bundles_post_ra>
